<compile_context>
chip_gen: v7x
topology: tpu7x:2x2x1
jax: 0.10.0
libtpu: 0.0.40
codegen_flags: <defaults>
</compile_context>

<pallas_src>
import functools

import jax
import jax.numpy as jnp
from jax import lax
from jax.experimental import pallas as pl
from jax.experimental.pallas import tpu as pltpu


# Contract the trailing (feature) axis of both operands: A[1,K] x B[TB,K] -> [1,TB].
_NT_DIMS = (((1,), (1,)), ((), ()))


def ncf_kernel(u_ref, i_ref,
               w1u_ref, w1i_ref, b1_ref,
               w2_ref, b2_ref,
               w3_ref, b3_ref,
               wfg_ref, wfm_ref, bf_ref,
               out_ref, *, emb_size):
    E = emb_size
    u = u_ref[...]            # [TB, 2E] bf16  (cols [0:E)=GMF emb, [E:2E)=MLP emb)
    itm = i_ref[...]          # [TB, 2E] bf16

    # GMF branch: elementwise product of the GMF halves (offset-0 lane slice).
    # Upcast to f32 for the VPU multiply (v5e-safe; VALU has slack here).
    gmf = u[:, :E].astype(jnp.float32) * itm[:, :E].astype(jnp.float32)   # [TB, E]

    # MLP layer 1 on the *full* merged rows against zero-padded weights:
    #   concat(u_mlp, i_mlp) @ W1.T + b1 == u_row @ W1u_pad + i_row @ W1i_pad + b1
    # (bf16 MXU operands, f32 accumulation; no lane-offset slicing needed).
    h = (jnp.dot(u, w1u_ref[...], preferred_element_type=jnp.float32)
         + jnp.dot(itm, w1i_ref[...], preferred_element_type=jnp.float32)
         + b1_ref[...])                                                    # [TB, 64]
    h = jnp.maximum(h, 0.0)

    # Layers 2/3: bf16 LHS halves MXU pushes; accumulate in f32.
    h = jnp.dot(h.astype(jnp.bfloat16), w2_ref[...],
                preferred_element_type=jnp.float32) + b2_ref[...]          # [TB, 32]
    h = jnp.maximum(h, 0.0)
    h = jnp.dot(h.astype(jnp.bfloat16), w3_ref[...],
                preferred_element_type=jnp.float32) + b3_ref[...]          # [TB, 16]
    h = jnp.maximum(h, 0.0)

    # Fusion Linear (output width 1), produced lane-dense as a [1, TB] row:
    #   logit[b] = wf_gmf . gmf[b, :] + wf_mlp . h[b, :] + bf
    # Two small MXU dot_generals contracting the feature axis of both operands
    # replace the VPU-mul + XLU lane-reduce and keep the batch in lanes, so the
    # sigmoid and the store are full-width.
    logit = (lax.dot_general(wfg_ref[...], gmf, _NT_DIMS,
                             preferred_element_type=jnp.float32)
             + lax.dot_general(wfm_ref[...], h, _NT_DIMS,
                               preferred_element_type=jnp.float32)
             + bf_ref[...])                                                # [1, TB]

    # Sigmoid: clamp so exp can't overflow, then EUP exp + approx reciprocal
    # (both land in otherwise-idle slots; only TB/128 lane-dense vregs now).
    logit = jnp.clip(logit, -30.0, 30.0)
    out_ref[0] = pl.reciprocal(1.0 + jnp.exp(-logit), approx=True)         # [1, TB]


def prepare_params(params, emb_dtype=jnp.bfloat16):
    """One-time parameter preparation hoisted out of the per-call forward path:
    merged bf16 embedding tables, zero-padded/transposed W1, transposed bf16
    W2/W3, split fusion weights, reshaped biases."""
    f32 = jnp.float32
    E = params["user_emb_gmf"].shape[1]

    # Merged [*, 2E] tables: 2 gathers instead of 4, 128-byte gathered rows.
    user_table = jnp.concatenate(
        [params["user_emb_gmf"], params["user_emb_mlp"]], axis=-1).astype(emb_dtype)
    item_table = jnp.concatenate(
        [params["item_emb_gmf"], params["item_emb_mlp"]], axis=-1).astype(emb_dtype)

    w1t = params["w1"].T.astype(f32)                       # [2E, 64]
    zeros = jnp.zeros((E, w1t.shape[1]), f32)
    # Rows [0:E) are zero so the kernel can feed the full merged rows (GMF part
    # of the row multiplies zeros) -- no lane-offset slice inside the kernel.
    w1u_pad = jnp.concatenate([zeros, w1t[:E]], axis=0).astype(emb_dtype)  # [2E, 64]
    w1i_pad = jnp.concatenate([zeros, w1t[E:]], axis=0).astype(emb_dtype)  # [2E, 64]

    wf = params["wf"].astype(f32)                          # [1, E+16]
    return {
        "user_table": user_table,
        "item_table": item_table,
        "w1u": w1u_pad,
        "w1i": w1i_pad,
        "b1": params["b1"].reshape(1, -1).astype(f32),
        "w2": params["w2"].T.astype(emb_dtype),            # [64, 32] bf16
        "b2": params["b2"].reshape(1, -1).astype(f32),
        "w3": params["w3"].T.astype(emb_dtype),            # [32, 16] bf16
        "b3": params["b3"].reshape(1, -1).astype(f32),
        "wf_gmf": wf[:, :E],                               # [1, E]  f32
        "wf_mlp": wf[:, E:],                               # [1, 16] f32
        "bf": params["bf"].reshape(1, 1).astype(f32),
    }


def _round_up(x, m):
    return ((x + m - 1) // m) * m


@functools.partial(jax.jit, static_argnames=("tb",))
def ncf_forward(user_ids, item_ids, prep, *, tb=8192):
    """Embedding gather in JAX glue + batch-tiled Pallas hot path."""
    assert tb % 128 == 0, "batch tile must be a multiple of 128 (lane-dense output)"
    B = user_ids.shape[0]
    twoE = prep["user_table"].shape[1]
    E = twoE // 2

    # Batch tile: multiple of 128; ~12-14 MiB VMEM at TB=8192 (double-buffered
    # bf16 inputs + f32 intermediates), fits every generation's budget.
    TB = min(tb, _round_up(B, 128))
    num_tiles = pl.cdiv(B, TB)
    Bp = num_tiles * TB

    if Bp != B:
        pad = Bp - B
        user_ids = jnp.pad(user_ids, (0, pad))   # index 0 is valid; rows sliced off below
        item_ids = jnp.pad(item_ids, (0, pad))

    # Embedding lookups (gather) -- glue outside the kernel.
    # TODO(synk): for sorted/blocked ids, fuse the gather into the kernel
    # (ids via PrefetchScalarGridSpec in SMEM, tables in memory_space=pl.ANY with
    # manual DMA) to avoid re-reading the gathered [Bp, 2E] activations from HBM.
    u_rows = prep["user_table"][user_ids]        # [Bp, 2E] bf16
    i_rows = prep["item_table"][item_ids]        # [Bp, 2E] bf16

    emb_spec = pl.BlockSpec((TB, twoE), lambda i: (i, 0))

    def resident(a):
        # Full-extent block with a constant index_map: fetched once, stays in VMEM.
        return pl.BlockSpec(a.shape, lambda i: (0,) * a.ndim)

    out = pl.pallas_call(
        functools.partial(ncf_kernel, emb_size=E),
        out_shape=jax.ShapeDtypeStruct((num_tiles, 1, TB), jnp.float32),
        grid=(num_tiles,),
        in_specs=[emb_spec, emb_spec,
                  resident(prep["w1u"]), resident(prep["w1i"]), resident(prep["b1"]),
                  resident(prep["w2"]), resident(prep["b2"]),
                  resident(prep["w3"]), resident(prep["b3"]),
                  resident(prep["wf_gmf"]), resident(prep["wf_mlp"]), resident(prep["bf"])],
        out_specs=pl.BlockSpec((1, 1, TB), lambda i: (i, 0, 0)),
        compiler_params=pltpu.CompilerParams(
            # Shard batch tiles across v7x TensorCores; keep num_tiles >= 2 there.
            dimension_semantics=("parallel",),
            # Explicit scoped-VMEM limit: covers TB up to ~16K and is above v5e's
            # 16 MiB default while staying under every physical budget.
            vmem_limit_bytes=32 * 1024 * 1024),
    )(u_rows, i_rows,
      prep["w1u"], prep["w1i"], prep["b1"],
      prep["w2"], prep["b2"],
      prep["w3"], prep["b3"],
      prep["wf_gmf"], prep["wf_mlp"], prep["bf"])

    return out.reshape(-1, 1)[:B]


def init_params(key, num_users, num_items, embedding_size=32, mlp_layers=(64, 32, 16)):
    ks = jax.random.split(key, 12)
    f32 = jnp.float32
    E = embedding_size
    return {
        "user_emb_gmf": jax.random.normal(ks[0], (num_users, E), f32) * 0.1,
        "item_emb_gmf": jax.random.normal(ks[1], (num_items, E), f32) * 0.1,
        "user_emb_mlp": jax.random.normal(ks[2], (num_users, E), f32) * 0.1,
        "item_emb_mlp": jax.random.normal(ks[3], (num_items, E), f32) * 0.1,
        # nn.Linear(2E, 64)
        "w1": jax.random.normal(ks[4], (mlp_layers[0], 2 * E), f32) * (1.0 / jnp.sqrt(2 * E)),
        "b1": jax.random.normal(ks[5], (mlp_layers[0],), f32) * 0.01,
        # nn.Linear(64, 32)
        "w2": jax.random.normal(ks[6], (mlp_layers[1], mlp_layers[0]), f32) * (1.0 / jnp.sqrt(mlp_layers[0])),
        "b2": jax.random.normal(ks[7], (mlp_layers[1],), f32) * 0.01,
        # nn.Linear(32, 16)
        "w3": jax.random.normal(ks[8], (mlp_layers[2], mlp_layers[1]), f32) * (1.0 / jnp.sqrt(mlp_layers[1])),
        "b3": jax.random.normal(ks[9], (mlp_layers[2],), f32) * 0.01,
        # nn.Linear(E + 16, 1)
        "wf": jax.random.normal(ks[10], (1, E + mlp_layers[2]), f32) * (1.0 / jnp.sqrt(E + mlp_layers[2])),
        "bf": jax.random.normal(ks[11], (1,), f32) * 0.01,
    }


def reference_forward(user_ids, item_ids, params):
    """Pure-JAX f32 reference mirroring the PyTorch module exactly."""
    ugmf = params["user_emb_gmf"][user_ids]
    igmf = params["item_emb_gmf"][item_ids]
    gmf = ugmf * igmf
    umlp = params["user_emb_mlp"][user_ids]
    imlp = params["item_emb_mlp"][item_ids]
    x = jnp.concatenate([umlp, imlp], axis=-1)
    x = jax.nn.relu(x @ params["w1"].T + params["b1"])
    x = jax.nn.relu(x @ params["w2"].T + params["b2"])
    x = jax.nn.relu(x @ params["w3"].T + params["b3"])
    comb = jnp.concatenate([gmf, x], axis=-1)
    logit = comb @ params["wf"].T + params["bf"]
    return jax.nn.sigmoid(logit)


if __name__ == "__main__":
    num_users, num_items, E = 10, 15, 32
    B = 200   # not a multiple of the tile -> exercises padding + multi-step grid

    key = jax.random.PRNGKey(0)
    kp, ku, ki = jax.random.split(key, 3)
    params = init_params(kp, num_users, num_items, embedding_size=E)
    prep = prepare_params(params)

    user_ids = jax.random.randint(ku, (B,), 0, num_users, dtype=jnp.int32)
    item_ids = jax.random.randint(ki, (B,), 0, num_items, dtype=jnp.int32)

    out = ncf_forward(user_ids, item_ids, prep, tb=128)   # 2 batch tiles (pads 200 -> 256)
    out = jax.block_until_ready(out)

    ref = reference_forward(user_ids, item_ids, params)
    assert out.shape == (B, 1), out.shape
    max_err = float(jnp.max(jnp.abs(out - ref)))
    # bf16 embedding / W1-3 storage + approx reciprocal -> loosened tolerance vs f32 ref.
    assert jnp.allclose(out, ref, atol=2e-2, rtol=2e-2), ("max_abs_err", max_err)

    print("KERNEL_OK")
</pallas_src>

<mosaic_0001>
module attributes {stable_mosaic.version = 11 : i64} {
  func.func @ncf_kernel(%arg0: i32, %arg1: memref<128x64xbf16, #tpu.memory_space<vmem>>, %arg2: memref<128x64xbf16, #tpu.memory_space<vmem>>, %arg3: memref<64x64xbf16, #tpu.memory_space<vmem>>, %arg4: memref<64x64xbf16, #tpu.memory_space<vmem>>, %arg5: memref<1x64xf32, #tpu.memory_space<vmem>>, %arg6: memref<64x32xbf16, #tpu.memory_space<vmem>>, %arg7: memref<1x32xf32, #tpu.memory_space<vmem>>, %arg8: memref<32x16xbf16, #tpu.memory_space<vmem>>, %arg9: memref<1x16xf32, #tpu.memory_space<vmem>>, %arg10: memref<1x32xf32, #tpu.memory_space<vmem>>, %arg11: memref<1x16xf32, #tpu.memory_space<vmem>>, %arg12: memref<1x1xf32, #tpu.memory_space<vmem>>, %arg13: memref<1x1x128xf32, #tpu.memory_space<vmem>>) attributes {dimension_semantics = [#tpu.dimension_semantics<parallel>], iteration_bounds = array<i64: 2>, scalar_prefetch = 0 : i64, scratch_operands = 0 : i64, tpu.core_type = #tpu.core_type<tc>, window_params = [{transform_indices = @transform_0, window_bounds = array<i64: 128, 64>}, {transform_indices = @transform_1, window_bounds = array<i64: 128, 64>}, {pipeline_mode = #tpu.pipeline_mode<synchronous>, transform_indices = @transform_2, window_bounds = array<i64: 64, 64>}, {pipeline_mode = #tpu.pipeline_mode<synchronous>, transform_indices = @transform_3, window_bounds = array<i64: 64, 64>}, {pipeline_mode = #tpu.pipeline_mode<synchronous>, transform_indices = @transform_4, window_bounds = array<i64: 1, 64>}, {pipeline_mode = #tpu.pipeline_mode<synchronous>, transform_indices = @transform_5, window_bounds = array<i64: 64, 32>}, {pipeline_mode = #tpu.pipeline_mode<synchronous>, transform_indices = @transform_6, window_bounds = array<i64: 1, 32>}, {pipeline_mode = #tpu.pipeline_mode<synchronous>, transform_indices = @transform_7, window_bounds = array<i64: 32, 16>}, {pipeline_mode = #tpu.pipeline_mode<synchronous>, transform_indices = @transform_8, window_bounds = array<i64: 1, 16>}, {pipeline_mode = #tpu.pipeline_mode<synchronous>, transform_indices = @transform_9, window_bounds = array<i64: 1, 32>}, {pipeline_mode = #tpu.pipeline_mode<synchronous>, transform_indices = @transform_10, window_bounds = array<i64: 1, 16>}, {pipeline_mode = #tpu.pipeline_mode<synchronous>, transform_indices = @transform_11, window_bounds = array<i64: 1, 1>}, {transform_indices = @transform_12, window_bounds = array<i64: 1, 1, 128>}]} {
    %c0 = arith.constant 0 : index
    %c0_0 = arith.constant 0 : index
    %0 = vector.load %arg1[%c0, %c0_0] : memref<128x64xbf16, #tpu.memory_space<vmem>>, vector<128x64xbf16>
    %c0_1 = arith.constant 0 : index
    %c0_2 = arith.constant 0 : index
    %1 = vector.load %arg2[%c0_1, %c0_2] : memref<128x64xbf16, #tpu.memory_space<vmem>>, vector<128x64xbf16>
    %2 = vector.extract_strided_slice %0 {offsets = [0, 0], sizes = [128, 32], strides = [1, 1]} : vector<128x64xbf16> to vector<128x32xbf16>
    %3 = arith.extf %2 : vector<128x32xbf16> to vector<128x32xf32>
    %4 = vector.extract_strided_slice %1 {offsets = [0, 0], sizes = [128, 32], strides = [1, 1]} : vector<128x64xbf16> to vector<128x32xbf16>
    %5 = arith.extf %4 : vector<128x32xbf16> to vector<128x32xf32>
    %6 = arith.mulf %3, %5 : vector<128x32xf32>
    %c0_3 = arith.constant 0 : index
    %c0_4 = arith.constant 0 : index
    %7 = vector.load %arg3[%c0_3, %c0_4] : memref<64x64xbf16, #tpu.memory_space<vmem>>, vector<64x64xbf16>
    %cst = arith.constant dense<0.000000e+00> : vector<128x64xf32>
    %8 = tpu.matmul %0, %7, %cst {dimension_numbers = #tpu.dot_dimension_numbers<[1], [0], [0], [1], [0, 0, 1, 1], [], []>} : vector<128x64xbf16>, vector<64x64xbf16>, vector<128x64xf32> -> vector<128x64xf32>
    %c0_5 = arith.constant 0 : index
    %c0_6 = arith.constant 0 : index
    %9 = vector.load %arg4[%c0_5, %c0_6] : memref<64x64xbf16, #tpu.memory_space<vmem>>, vector<64x64xbf16>
    %cst_7 = arith.constant dense<0.000000e+00> : vector<128x64xf32>
    %10 = tpu.matmul %1, %9, %cst_7 {dimension_numbers = #tpu.dot_dimension_numbers<[1], [0], [0], [1], [0, 0, 1, 1], [], []>} : vector<128x64xbf16>, vector<64x64xbf16>, vector<128x64xf32> -> vector<128x64xf32>
    %11 = arith.addf %8, %10 : vector<128x64xf32>
    %c0_8 = arith.constant 0 : index
    %c0_9 = arith.constant 0 : index
    %12 = vector.load %arg5[%c0_8, %c0_9] : memref<1x64xf32, #tpu.memory_space<vmem>>, vector<1x64xf32>
    %13 = vector.broadcast %12 : vector<1x64xf32> to vector<128x64xf32>
    %14 = arith.addf %11, %13 : vector<128x64xf32>
    %cst_10 = arith.constant 0.000000e+00 : f32
    %15 = vector.broadcast %cst_10 : f32 to vector<128x64xf32>
    %16 = arith.maximumf %14, %15 : vector<128x64xf32>
    %17 = arith.truncf %16 : vector<128x64xf32> to vector<128x64xbf16>
    %c0_11 = arith.constant 0 : index
    %c0_12 = arith.constant 0 : index
    %18 = vector.load %arg6[%c0_11, %c0_12] : memref<64x32xbf16, #tpu.memory_space<vmem>>, vector<64x32xbf16>
    %cst_13 = arith.constant dense<0.000000e+00> : vector<128x32xf32>
    %19 = tpu.matmul %17, %18, %cst_13 {dimension_numbers = #tpu.dot_dimension_numbers<[1], [0], [0], [1], [0, 0, 1, 1], [], []>} : vector<128x64xbf16>, vector<64x32xbf16>, vector<128x32xf32> -> vector<128x32xf32>
    %c0_14 = arith.constant 0 : index
    %c0_15 = arith.constant 0 : index
    %20 = vector.load %arg7[%c0_14, %c0_15] : memref<1x32xf32, #tpu.memory_space<vmem>>, vector<1x32xf32>
    %21 = vector.broadcast %20 : vector<1x32xf32> to vector<128x32xf32>
    %22 = arith.addf %19, %21 : vector<128x32xf32>
    %cst_16 = arith.constant 0.000000e+00 : f32
    %23 = vector.broadcast %cst_16 : f32 to vector<128x32xf32>
    %24 = arith.maximumf %22, %23 : vector<128x32xf32>
    %25 = arith.truncf %24 : vector<128x32xf32> to vector<128x32xbf16>
    %c0_17 = arith.constant 0 : index
    %c0_18 = arith.constant 0 : index
    %26 = vector.load %arg8[%c0_17, %c0_18] : memref<32x16xbf16, #tpu.memory_space<vmem>>, vector<32x16xbf16>
    %cst_19 = arith.constant dense<0.000000e+00> : vector<128x16xf32>
    %27 = tpu.matmul %25, %26, %cst_19 {dimension_numbers = #tpu.dot_dimension_numbers<[1], [0], [0], [1], [0, 0, 1, 1], [], []>} : vector<128x32xbf16>, vector<32x16xbf16>, vector<128x16xf32> -> vector<128x16xf32>
    %c0_20 = arith.constant 0 : index
    %c0_21 = arith.constant 0 : index
    %28 = vector.load %arg9[%c0_20, %c0_21] : memref<1x16xf32, #tpu.memory_space<vmem>>, vector<1x16xf32>
    %29 = vector.broadcast %28 : vector<1x16xf32> to vector<128x16xf32>
    %30 = arith.addf %27, %29 : vector<128x16xf32>
    %cst_22 = arith.constant 0.000000e+00 : f32
    %31 = vector.broadcast %cst_22 : f32 to vector<128x16xf32>
    %32 = arith.maximumf %30, %31 : vector<128x16xf32>
    %c0_23 = arith.constant 0 : index
    %c0_24 = arith.constant 0 : index
    %33 = vector.load %arg10[%c0_23, %c0_24] : memref<1x32xf32, #tpu.memory_space<vmem>>, vector<1x32xf32>
    %cst_25 = arith.constant dense<0.000000e+00> : vector<1x128xf32>
    %34 = tpu.matmul %33, %6, %cst_25 {dimension_numbers = #tpu.dot_dimension_numbers<[1], [1], [0], [0], [0, 0, 1, 0], [], []>} : vector<1x32xf32>, vector<128x32xf32>, vector<1x128xf32> -> vector<1x128xf32>
    %c0_26 = arith.constant 0 : index
    %c0_27 = arith.constant 0 : index
    %35 = vector.load %arg11[%c0_26, %c0_27] : memref<1x16xf32, #tpu.memory_space<vmem>>, vector<1x16xf32>
    %cst_28 = arith.constant dense<0.000000e+00> : vector<1x128xf32>
    %36 = tpu.matmul %35, %32, %cst_28 {dimension_numbers = #tpu.dot_dimension_numbers<[1], [1], [0], [0], [0, 0, 1, 0], [], []>} : vector<1x16xf32>, vector<128x16xf32>, vector<1x128xf32> -> vector<1x128xf32>
    %37 = arith.addf %34, %36 : vector<1x128xf32>
    %c0_29 = arith.constant 0 : index
    %c0_30 = arith.constant 0 : index
    %38 = vector.load %arg12[%c0_29, %c0_30] : memref<1x1xf32, #tpu.memory_space<vmem>>, vector<1x1xf32>
    %39 = vector.broadcast %38 : vector<1x1xf32> to vector<1x128xf32>
    %40 = arith.addf %37, %39 : vector<1x128xf32>
    %cst_31 = arith.constant -3.000000e+01 : f32
    %cst_32 = arith.constant 3.000000e+01 : f32
    %41 = vector.broadcast %cst_31 : f32 to vector<1x128xf32>
    %42 = arith.maximumf %41, %40 : vector<1x128xf32>
    %43 = vector.broadcast %cst_32 : f32 to vector<1x128xf32>
    %44 = arith.minimumf %43, %42 : vector<1x128xf32>
    %cst_33 = arith.constant 0.000000e+00 : f32
    %45 = vector.broadcast %cst_33 : f32 to vector<1x128xf32>
    %46 = arith.subf %45, %44 : vector<1x128xf32>
    %47 = math.exp %46 : vector<1x128xf32>
    %cst_34 = arith.constant 1.000000e+00 : f32
    %48 = vector.broadcast %cst_34 : f32 to vector<1x128xf32>
    %49 = arith.addf %48, %47 : vector<1x128xf32>
    %50 = tpu.reciprocal %49 {approx = true} : vector<1x128xf32> -> vector<1x128xf32>
    %c0_35 = arith.constant 0 : index
    %c0_36 = arith.constant 0 : index
    %c0_37 = arith.constant 0 : index
    %51 = vector.load %arg13[%c0_35, %c0_36, %c0_37] : memref<1x1x128xf32, #tpu.memory_space<vmem>>, vector<1x1x128xf32>
    %52 = vector.shape_cast %51 : vector<1x1x128xf32> to vector<1x128xf32>
    %53 = vector.shape_cast %50 : vector<1x128xf32> to vector<1x1x128xf32>
    tpu.vector_store %arg13[%c0_35, %c0_36, %c0_37], %53 {strides = array<i32>} : memref<1x1x128xf32, #tpu.memory_space<vmem>>, vector<1x1x128xf32>,
    return
  }
  func.func @transform_0(%arg0: i32) -> (i32, i32) {
    %c0_i32 = arith.constant 0 : i32
    %c0_i32_0 = arith.constant 0 : i32
    return %arg0, %c0_i32 : i32, i32
  }
  func.func @transform_1(%arg0: i32) -> (i32, i32) {
    %c0_i32 = arith.constant 0 : i32
    %c0_i32_0 = arith.constant 0 : i32
    return %arg0, %c0_i32 : i32, i32
  }
  func.func @transform_2(%arg0: i32) -> (i32, i32) {
    %c0_i32 = arith.constant 0 : i32
    %c0_i32_0 = arith.constant 0 : i32
    %c0_i32_1 = arith.constant 0 : i32
    return %c0_i32, %c0_i32_0 : i32, i32
  }
  func.func @transform_3(%arg0: i32) -> (i32, i32) {
    %c0_i32 = arith.constant 0 : i32
    %c0_i32_0 = arith.constant 0 : i32
    %c0_i32_1 = arith.constant 0 : i32
    return %c0_i32, %c0_i32_0 : i32, i32
  }
  func.func @transform_4(%arg0: i32) -> (i32, i32) {
    %c0_i32 = arith.constant 0 : i32
    %c0_i32_0 = arith.constant 0 : i32
    %c0_i32_1 = arith.constant 0 : i32
    return %c0_i32, %c0_i32_0 : i32, i32
  }
  func.func @transform_5(%arg0: i32) -> (i32, i32) {
    %c0_i32 = arith.constant 0 : i32
    %c0_i32_0 = arith.constant 0 : i32
    %c0_i32_1 = arith.constant 0 : i32
    return %c0_i32, %c0_i32_0 : i32, i32
  }
  func.func @transform_6(%arg0: i32) -> (i32, i32) {
    %c0_i32 = arith.constant 0 : i32
    %c0_i32_0 = arith.constant 0 : i32
    %c0_i32_1 = arith.constant 0 : i32
    return %c0_i32, %c0_i32_0 : i32, i32
  }
  func.func @transform_7(%arg0: i32) -> (i32, i32) {
    %c0_i32 = arith.constant 0 : i32
    %c0_i32_0 = arith.constant 0 : i32
    %c0_i32_1 = arith.constant 0 : i32
    return %c0_i32, %c0_i32_0 : i32, i32
  }
  func.func @transform_8(%arg0: i32) -> (i32, i32) {
    %c0_i32 = arith.constant 0 : i32
    %c0_i32_0 = arith.constant 0 : i32
    %c0_i32_1 = arith.constant 0 : i32
    return %c0_i32, %c0_i32_0 : i32, i32
  }
  func.func @transform_9(%arg0: i32) -> (i32, i32) {
    %c0_i32 = arith.constant 0 : i32
    %c0_i32_0 = arith.constant 0 : i32
    %c0_i32_1 = arith.constant 0 : i32
    return %c0_i32, %c0_i32_0 : i32, i32
  }
  func.func @transform_10(%arg0: i32) -> (i32, i32) {
    %c0_i32 = arith.constant 0 : i32
    %c0_i32_0 = arith.constant 0 : i32
    %c0_i32_1 = arith.constant 0 : i32
    return %c0_i32, %c0_i32_0 : i32, i32
  }
  func.func @transform_11(%arg0: i32) -> (i32, i32) {
    %c0_i32 = arith.constant 0 : i32
    %c0_i32_0 = arith.constant 0 : i32
    %c0_i32_1 = arith.constant 0 : i32
    return %c0_i32, %c0_i32_0 : i32, i32
  }
  func.func @transform_12(%arg0: i32) -> (i32, i32, i32) {
    %c0_i32 = arith.constant 0 : i32
    %c0_i32_0 = arith.constant 0 : i32
    %c0_i32_1 = arith.constant 0 : i32
    return %arg0, %c0_i32, %c0_i32_0 : i32, i32, i32
  }
}

</mosaic_0001>

<bundles_post_ra>
// kernel: ncf_forward.1
= control target key start
LH: loop header
LB: loop body
LE: loop exit
PB: predicated region body
PF: predicated region fallthrough
CT: control target
= control target key end

     0   :  { %s2669_s0 = inlined_call_operand.vmem [shape: bf16[256,64], index: 0, kind: input, shape index: {}]   ;;  %s2670_s1 = inlined_call_operand.vmem [shape: bf16[256,64], index: 1, kind: input, shape index: {}]   ;;  %s2671_s2 = inlined_call_operand.vmem [shape: bf16[64,64], index: 2, kind: input, shape index: {}]   ;;  %s2672_s3 = inlined_call_operand.vmem [shape: bf16[64,64], index: 3, kind: input, shape index: {}]   ;;  %s2673_s4 = inlined_call_operand.vmem [shape: f32[1,64], index: 4, kind: input, shape index: {}]   ;;  %s2674_s5 = inlined_call_operand.vmem [shape: bf16[64,32], index: 5, kind: input, shape index: {}]   ;;  %s2675_s6 = inlined_call_operand.vmem [shape: f32[1,32], index: 6, kind: input, shape index: {}]   ;;  %s2676_s7 = inlined_call_operand.vmem [shape: bf16[32,16], index: 7, kind: input, shape index: {}]   ;;  %s2677_s8 = inlined_call_operand.vmem [shape: f32[1,16], index: 8, kind: input, shape index: {}]   ;;  %s2678_s9 = inlined_call_operand.vmem [shape: f32[1,32], index: 9, kind: input, shape index: {}]   ;;  %s2679_s10 = inlined_call_operand.vmem [shape: f32[1,16], index: 10, kind: input, shape index: {}]   ;;  %s2680_s11 = inlined_call_operand.<no memory space> [shape: f32[1,1], index: 11, kind: input, shape index: {}]   ;;  %s2681_s12 = inlined_call_operand.hbm [shape: f32[2,1,128], index: 12, kind: output, shape index: {}]  }
   0x1   :  { %2682 = sst [smem:[#allocation6_spill]] %s2669_s0  ;;  %v17_v0 = vstv %s2680_s11 }
   0x2   :  { %18 = vst [vmem:[#allocation2] sm:$0x1] %v17_v0 }
   0x3   :  { %19 = vsyncpa [#allocation4], 0 }
   0x4   :  { %21 = vsyncpa [#allocation4 + $0x1], 0  ;;  %s2305_s23 = smov 0   ;;  %s2307_s24 = smov 0  }
   0x5   :  { %s2309_s25 = smov 0   ;;  %s2311_s26 = smov 0  }
   0x6 LB: > { %s1640_s11 = sadd.s32 4294967295, %s2230_s26   ;;  %s1641_s27 = sadd.s32 4294967294, %s2230_s26   ;;  %s2230_s26 = sphi %s2311_s26, %s2693_s26   ;;  %s2226_s25 = sphi %s2309_s25, %s2692_s25   ;;  %s2222_s24 = sphi %s2307_s24, %s2691_s24   ;;  %s2218_s23 = sphi %s2305_s23, %s2690_s23  }
   0x7   : > { %s2328_s28 = sadd.s32 1, %s2230_s26   ;;  %s296_s29 = sadd.s32 1, %s2226_s25 }
   0x8   : > { %s293_s30 = ssub.s32 %s2230_s26, %s2328_s28  ;;  %p306_p0 = scmp.ne.s32.totalorder %s2226_s25, %s2222_s24 }
   0x9   : > { %p294_p1 = scmp.eq.s32.totalorder %s293_s30, 0  ;;  %p307_p2 = scmp.eq.s32.totalorder %s1640_s11, 1 }
   0xa   : > { %p312_p3 = scmp.ne.s32.totalorder %s2222_s24, %s2218_s23  ;;  %p313_p4 = scmp.eq.s32.totalorder %s1641_s27, 1 }
   0xb   : > { %s2338_s13 = scalar_select %p294_p1, %s2226_s25, %s296_s29  }
   0xc   : > { %p2340_p5 = por %p307_p2, %p306_p0  ;;  %p2344_p6 = por %p313_p4, %p312_p3 }
   0xd   : > { %p1644_p7 = scmp.ge.s32.totalorder %s2230_s26, 1  ;;  %p379_p8 = scmp.lt.s32.totalorder %s2230_s26, 3 }
   0xf   : > { %p380_p9 = pnand %p1644_p7, %p379_p8 }
  0x10   : > { %v2118_v1 = vld [vmem:[%s2672_s3] sm:$0xff] (!%p380_p9)   ;;  %s2353_s18 = sshll.u32 (!%p380_p9), %s1640_s11, 4  ;;  %v2119_v2 = vld [vmem:[%s2672_s3 + $0x8] sm:$0xff] (!%p380_p9)   ;;  %v2120_v3 = vld [vmem:[%s2672_s3 + $0x10] sm:$0xff] (!%p380_p9)   ;;  %s2685_s0 = sld [smem:[#allocation6_spill]] (!%p380_p9)  ;;  %vm598_vm0 = vcmask (!%p380_p9), 523264  }
  0x11   : > { %383 = sbr.rel (%p380_p9) target bundleno = 1053 (0x41d), region = 68  ;;  %p426_p10 = scmp.lt.s32.totalorder (!%p380_p9), %s2353_s18, 31  ;;  %1832 = vmatprep.subr.bf16.mxu0 (!%p380_p9), %v2118_v1  ;;  %v2121_v6 = vld [vmem:[%s2672_s3 + $0x18] sm:$0xff] (!%p380_p9)   ;;  %v2125_v23 = vld [vmem:[%s2671_s2] sm:$0xff] (!%p380_p9)   ;;  %v2128_v31 = vld [vmem:[%s2671_s2 + $0x8] sm:$0xff] (!%p380_p9)   ;;  %vm1159_vm1 = vcmask (!%p380_p9), 261120  }
  0x12   : > { %1833 = vmatpush3.bf16.msra.mxu0 (!%p380_p9), %v2118_v1  ;;  %v2142_v33 = vld [vmem:[%s2674_s5] sm:$0xff] (!%p380_p9)   ;;  %v2143_v40 = vld [vmem:[%s2674_s5 + $0x8] sm:$0xff] (!%p380_p9)   ;;  %v2131_v58 = vld [vmem:[%s2671_s2 + $0x10] sm:$0xff] (!%p380_p9)   ;;  %vm2233_vm3 = vmmov (!%p380_p9), 0   ;;  %vm1299_vm4 = vcmask (!%p380_p9), 130048   ;;  %s2627_s19 = scalar_lea.hbm (!%p380_p9), %s2681_s12, %s2353_s18 }
  0x13   : > { %1834 = vmatprep.subr.bf16.mxu0 (!%p380_p9), %v2119_v2  ;;  %1880 = vmatprep.subr.bf16.mxu1 (!%p380_p9), %v2142_v33  ;;  %vm2538_vm2 = vmpackc.low (!%p380_p9), %vm1159_vm1, %vm1159_vm1 }
  0x14   : > { %1881 = vmatpush3.bf16.msra.mxu1 (!%p380_p9), %v2142_v33  ;;  %vm2591_vm5 = vmpackc.low (!%p380_p9), %vm1299_vm4, %vm1299_vm4 }
  0x15   : > { %1882 = vmatprep.subr.bf16.mxu1 (!%p380_p9), %v2143_v40 }
  0x16   : > { %1835 = vmatpush3.bf16.msra.mxu0 (!%p380_p9), %v2119_v2 }
  0x17   : > { %1836 = vmatprep.subr.bf16.mxu0 (!%p380_p9), %v2120_v3 }
  0x18   : > { %s427_s21 = scalar_select %p426_p10, %s2353_s18, 31  ;;  %1883 = vmatpush3.bf16.msra.mxu1 %v2143_v40 }
  0x1a   : > { %s1646_s29 = sshll.u32 %s427_s21, 2  ;;  %1837 = vmatpush3.bf16.msra.mxu0 %v2120_v3 }
  0x1b   : > { %s2366_s11 = scalar_lea.vmem %s2685_s0, %s1646_s29  ;;  %s2371_s20 = scalar_lea.vmem %s2670_s1, %s1646_s29  ;;  %1838 = vmatprep.subr.bf16.mxu0 %v2121_v6 }
  0x1c   : > { %v2374_v4 = vld [vmem:[%s2366_s11] sm:$0xff]   ;;  %v2383_v11 = vld [vmem:[%s2366_s11 + $0x8] sm:$0xff]   ;;  %v458_v20 = vld [vmem:[%s2371_s20 + $0x10] sm:$0xff]   ;;  %s423_s29 = sand.u32 1, %s2222_s24  }
  0x1d   : > { %v454_v5 = vld [vmem:[%s2371_s20] sm:$0xff]   ;;  %v470_v7 = vunpack.c.l.bf16 %v2374_v4  ;;  %v471_v8 = vunpack.c.h.bf16 %v2374_v4  ;;  %v456_v12 = vld [vmem:[%s2371_s20 + $0x8] sm:$0xff]   ;;  %v472_v13 = vunpack.c.l.bf16 %v2383_v11  ;;  %v473_v14 = vunpack.c.h.bf16 %v2383_v11  ;;  %v2404_v24 = vld [vmem:[%s2371_s20 + $0x18] sm:$0xff]   ;;  %s424_s30 = scalar_lea.vmem [#allocation3], %s423_s29  ;;  %s1562_s21 = scalar_lea.sflag [#allocation4], %s423_s29 }
  0x1e   : > { %v486_v9 = vunpack.c.l.bf16 %v454_v5  ;;  %v487_v10 = vunpack.c.h.bf16 %v454_v5  ;;  %v488_v15 = vunpack.c.l.bf16 %v456_v12  ;;  %v489_v18 = vunpack.c.h.bf16 %v456_v12  ;;  %1840 = vmatprep.mubr.msk.bf16.mxu0 %vm598_vm0, %v454_v5  ;;  %v2407_v25 = vld [vmem:[%s2371_s20 + $0x20] sm:$0xff]   ;;  %v2410_v26 = vld [vmem:[%s2371_s20 + $0x28] sm:$0xff]   ;;  %v2413_v27 = vld [vmem:[%s2371_s20 + $0x30] sm:$0xff]   ;;  %1839 = vmatpush3.bf16.msra.mxu0 %v2121_v6 }
  0x1f   : > { %v2416_v28 = vld [vmem:[%s2366_s11 + $0x10] sm:$0xff]   ;;  %v490_v29 = vunpack.c.l.bf16 %v458_v20  ;;  %v491_v30 = vunpack.c.h.bf16 %v458_v20  ;;  %v2422_v32 = vld [vmem:[%s2366_s11 + $0x18] sm:$0xff]   ;;  %v492_v34 = vunpack.c.l.bf16 %v2404_v24  ;;  %v493_v35 = vunpack.c.h.bf16 %v2404_v24  ;;  %v446_v39 = vld [vmem:[%s2366_s11 + $0x20] sm:$0xff]   ;;  %1856 = vmatprep.subr.bf16.mxu0 %v2125_v23 }
  0x20   : > { %v2388_v16 = vmul.f32 %v486_v9, %v470_v7  ;;  %v2390_v17 = vmul.f32 %v487_v10, %v471_v8  ;;  %v2393_v19 = vmul.f32 %v488_v15, %v472_v13  ;;  %v2398_v22 = vmul.f32 %v489_v18, %v473_v14  ;;  %v468_v38 = vld [vmem:[%s2371_s20 + $0x38] sm:$0xff]   ;;  %v448_v57 = vld [vmem:[%s2366_s11 + $0x28] sm:$0xff]   ;;  %v450_v63 = vld [vmem:[%s2366_s11 + $0x30] sm:$0xff]   ;;  %s2236_s20 = smov [#allocation3]  }
  0x21   : > { %v494_v36 = vunpack.c.l.bf16 %v2407_v25  ;;  %v495_v37 = vunpack.c.h.bf16 %v2407_v25  ;;  %v496_v41 = vunpack.c.l.bf16 %v2410_v26  ;;  %v497_v42 = vunpack.c.h.bf16 %v2410_v26  ;;  %1841 = vmatmul.mubr.msk.bf16.vlgmr.msra.gmra.mrb[0].mxu0 %vm598_vm0, %v456_v12  ;;  %v452_v2 = vld [vmem:[%s2366_s11 + $0x38] sm:$0xff]   ;;  %v2146_v14 = vld [vmem:[%s2676_s7] sm:$0xff]   ;;  %s1574_s11 = sshll.u32 %s424_s30, 4  ;;  %s2172_s27 = sshll.u32 %s2236_s20, 4  ;;  %s2629_s11 = int_to_ptr.vmem [resolvable:$true] %s1574_s11  ;;  %s2173_s27 = int_to_ptr.vmem [resolvable:$false] %s2172_s27 }
  0x22   : > { %v2027_v21 = vpack.c.bf16 %v2390_v17, %v2388_v16  ;;  %v498_v43 = vunpack.c.l.bf16 %v2413_v27  ;;  %v474_v44 = vunpack.c.l.bf16 %v2416_v28  ;;  %v499_v45 = vunpack.c.h.bf16 %v2413_v27  ;;  %1857 = vmatpush3.bf16.msra.mxu0 %v2125_v23  ;;  %1844 = vmatprep.mubr.msk.bf16.mxu0 %vm598_vm0, %v458_v20  ;;  %v2134_v10 = vld [vmem:[%s2671_s2 + $0x18] sm:$0xff]   ;;  %v1689_v15 = vld [vmem:[%s2673_s4] ss:$0 sm:$0xff]  ;;  %s2168_s22 = scalar_lea.vmem %s2629_s11, 16  ;;  %s2174_s0 = scalar_lea.vmem %s2173_s27, 32 }
  0x23   : > { %v475_v46 = vunpack.c.h.bf16 %v2416_v28  ;;  %v476_v47 = vunpack.c.l.bf16 %v2422_v32  ;;  %v477_v48 = vunpack.c.h.bf16 %v2422_v32  ;;  %v500_v49 = vunpack.c.l.bf16 %v468_v38  ;;  %1858 = vmatprep.subr.bf16.mxu0 %v2128_v31  ;;  %p2169_p11 = scmp.ne.s32.totalorder %s2629_s11, %s2168_s22  ;;  %p2175_p0 = scmp.lt.s32.totalorder %s2629_s11, %s2173_s27 }
  0x24   : > { %v2445_v50 = vmul.f32 %v490_v29, %v474_v44  ;;  %v478_v51 = vunpack.c.l.bf16 %v446_v39  ;;  %v479_v52 = vunpack.c.h.bf16 %v446_v39  ;;  %v501_v53 = vunpack.c.h.bf16 %v468_v38  ;;  %p2176_p1 = scmp.lt.s32.totalorder %s2174_s0, %s2168_s22 }
  0x25   : > { %v2448_v54 = vmul.f32 %v491_v30, %v475_v46  ;;  %v2450_v55 = vmul.f32 %v492_v34, %v476_v47  ;;  %v2452_v56 = vmul.f32 %v493_v35, %v477_v48  ;;  %v480_v61 = vunpack.c.l.bf16 %v448_v57  ;;  %p2170_p12 = pnand %p2169_p11, %p2340_p5 }
  0x26   : > { %v2458_v59 = vmul.f32 %v494_v36, %v478_v51  ;;  %v2460_v60 = vmul.f32 %v495_v37, %v479_v52  ;;  %v481_v62 = vunpack.c.h.bf16 %v448_v57  ;;  %v482_v0 = vunpack.c.l.bf16 %v450_v63  ;;  %1859 = vmatpush3.bf16.msra.mxu0 %v2128_v31  ;;  %p2177_p2 = por %p2176_p1, %p2175_p0 }
  0x27   : > { %v483_v1 = vunpack.c.h.bf16 %v450_v63  ;;  %v2464_v3 = vmul.f32 %v496_v41, %v480_v61  ;;  %v484_v6 = vunpack.c.l.bf16 %v452_v2  ;;  %v485_v7 = vunpack.c.h.bf16 %v452_v2  ;;  %1860 = vmatprep.subr.bf16.mxu0 %v2131_v58  ;;  %p2171_p13 = pneg %p2170_p12 }
  0x28   : > { %v2466_v5 = vmul.f32 %v497_v42, %v481_v62  ;;  %v2468_v8 = vmul.f32 %v498_v43, %v482_v0  ;;  %v2039_v16 = vpack.c.bf16 %v2452_v56, %v2450_v55  ;;  %v2043_v17 = vpack.c.bf16 %v2460_v60, %v2458_v59  ;;  %v1542_v55 = vld [vmem:[#allocation2] sm:$0x1] }
  0x29   : > { %v2470_v9 = vmul.f32 %v499_v45, %v483_v1  ;;  %v2475_v12 = vmul.f32 %v500_v49, %v484_v6  ;;  %v2477_v13 = vmul.f32 %v501_v53, %v485_v7  ;;  %1845 = vmatmul.mubr.msk.bf16.gmra.mrb[4].mxu0 %vm598_vm0, %v2404_v24  ;;  %v2235_v56 = vmov 0   ;;  %v1703_v59 = vld [vmem:[%s2677_s8] ss:$0 sm:$0xff]  ;;  %p2178_p3 = pnand %p2177_p2, %p2171_p13 }
  0x2a   : > { %1848 = vmatprep.mubr.msk.bf16.mxu0 %vm598_vm0, %v2407_v25  ;;  %1861 = vmatpush3.bf16.msra.mxu0 %v2131_v58 }
  0x2b   : > { %1862 = vmatprep.subr.bf16.mxu0 %v2134_v10  ;;  %2117 = vset.pattern.permute.xlu0 %v2235_v56 }
  0x2c   : > { %1545 = vperm.xlu0 %2117, %v1542_v55   ;;  %v1548_v55 = vlaneseq }
  0x2e   : > { %1863 = vmatpush3.bf16.msra.mxu0 %v2134_v10  ;;  %v1549_v56 = vshrl.u32 %v1548_v55, 7 }
  0x31   : > { %1849 = vmatmul.mubr.msk.bf16.gmra.mrb[8].mxu0 %vm598_vm0, %v2410_v26 }
  0x32   : > { %1852 = vmatprep.mubr.msk.bf16.mxu0 %vm598_vm0, %v2413_v27 }
  0x39   : > { %1853 = vmatmul.mubr.msk.bf16.gmra.mrb[12].mxu0 %vm598_vm0, %v468_v38  ;;  %v2147_v38 = vld [vmem:[%s2676_s7 + $0x8] sm:$0xff]  }
  0x3a   : > { %1864 = vmatprep.mubr.msk.bf16.mxu0 %vm598_vm0, %v2374_v4  ;;  %v2144_v4 = vld [vmem:[%s2674_s5 + $0x10] sm:$0xff]  }
  0x3b   : > { %1884 = vmatprep.subr.bf16.mxu1 %v2144_v4 }
  0x3c   : > { %1885 = vmatpush3.bf16.msra.mxu1 %v2144_v4 }
  0x41   : > { %1865 = vmatmul.mubr.msk.bf16.vlgmr.msra.gmra.mrb[0].mxu0 %vm598_vm0, %v2383_v11  ;;  %v2145_v11 = vld [vmem:[%s2674_s5 + $0x18] sm:$0xff]  }
  0x42   : > { %1868 = vmatprep.mubr.msk.bf16.mxu0 %vm598_vm0, %v2416_v28  ;;  %1886 = vmatprep.subr.bf16.mxu1 %v2145_v11 }
  0x43   : > { %1887 = vmatpush3.bf16.msra.mxu1 %v2145_v11 }
  0x44   : > { %1904 = vmatprep.subr.bf16.mxu1 %v2146_v14 }
  0x49   : > { %1869 = vmatmul.mubr.msk.bf16.gmra.mrb[4].mxu0 %vm598_vm0, %v2422_v32 }
  0x4a   : > { %1872 = vmatprep.mubr.msk.bf16.mxu0 %vm598_vm0, %v446_v39 }
  0x51   : > { %1873 = vmatmul.mubr.msk.bf16.gmra.mrb[8].mxu0 %vm598_vm0, %v448_v57 }
  0x52   : > { %1876 = vmatprep.mubr.msk.bf16.mxu0 %vm598_vm0, %v450_v63 }
  0x59   : > { %1877 = vmatmul.mubr.msk.bf16.gmra.mrb[12].mxu0 %vm598_vm0, %v452_v2 }
 0x114   : > { %v1866_v18 = vpop.f32.mrb[0].mxu0 }
 0x115   : > { %v914_v20 = vadd.f32 %v1866_v18, %v1689_v15  ;;  %v842_v23 = vpop.f32.mrb[1].mxu0 }
 0x116   : > { %v912_v24 = vadd.f32 %v1689_v15, %v842_v23  ;;  %v1867_v25 = vpop.f32.mrb[2].mxu0 }
 0x117   : > { %v915_v26 = vadd.f32 %v1867_v25, %v1689_v15  ;;  %v845_v27 = vpop.f32.mrb[3].mxu0  ;;  %v930_v29 = vmax.f32 %v914_v20, 0.0 }
 0x118   : > { %v913_v28 = vadd.f32 %v1689_v15, %v845_v27  ;;  %v928_v31 = vmax.f32 %v912_v24, 0.0 }
 0x119   : > { %v931_v30 = vmax.f32 %v915_v26, 0.0 }
 0x11a   : > { %v929_v32 = vmax.f32 %v913_v28, 0.0 }
 0x11b   : > { %v945_v33 = vpack.c.bf16 %v931_v30, %v930_v29 }
 0x11c   : > { %v1870_v34 = vpop.f32.mrb[4].mxu0  ;;  %v944_v35 = vpack.c.bf16 %v929_v32, %v928_v31  ;;  %v1690_v32 = vld [vmem:[%s2675_s6] ss:$0 sm:$0xff] }
 0x11d   : > { %v918_v36 = vadd.f32 %v1870_v34, %v1689_v15  ;;  %v858_v37 = vpop.f32.mrb[5].mxu0 }
 0x11e   : > { %v916_v39 = vadd.f32 %v1689_v15, %v858_v37  ;;  %v1871_v40 = vpop.f32.mrb[6].mxu0  ;;  %1888 = vmatprep.mubr.msk.bf16.mxu1 %vm598_vm0, %v944_v35 }
 0x11f   : > { %v919_v41 = vadd.f32 %v1871_v40, %v1689_v15  ;;  %v861_v42 = vpop.f32.mrb[7].mxu0  ;;  %1889 = vmatmul.mubr.msk.bf16.vlgmr.msra.gmra.mrb[0].mxu1 %vm598_vm0, %v945_v33  ;;  %v934_v44 = vmax.f32 %v918_v36, 0.0 }
 0x120   : > { %v917_v43 = vadd.f32 %v1689_v15, %v861_v42  ;;  %1905 = vmatpush3.bf16.msra.mxu1 %v2146_v14  ;;  %v932_v46 = vmax.f32 %v916_v39, 0.0 }
 0x121   : > { %v935_v45 = vmax.f32 %v919_v41, 0.0  ;;  %1906 = vmatprep.subr.bf16.mxu1 %v2147_v38 }
 0x122   : > { %v933_v47 = vmax.f32 %v917_v43, 0.0 }
 0x123   : > { %v947_v48 = vpack.c.bf16 %v935_v45, %v934_v44 }
 0x124   : > { %v946_v49 = vpack.c.bf16 %v933_v47, %v932_v46  ;;  %v1874_v51 = vpop.f32.mrb[8].mxu0  ;;  %1907 = vmatpush3.bf16.msra.mxu1 %v2147_v38 }
 0x125   : > { %v922_v52 = vadd.f32 %v1874_v51, %v1689_v15  ;;  %v874_v53 = vpop.f32.mrb[9].mxu0 }
 0x126   : > { %v920_v57 = vadd.f32 %v1689_v15, %v874_v53  ;;  %v1875_v58 = vpop.f32.mrb[10].mxu0  ;;  %1892 = vmatprep.mubr.msk.bf16.mxu1 %vm598_vm0, %v946_v49 }
 0x127   : > { %v923_v61 = vadd.f32 %v1875_v58, %v1689_v15  ;;  %v877_v62 = vpop.f32.mrb[11].mxu0  ;;  %1893 = vmatmul.mubr.msk.bf16.gmra.mrb[4].mxu1 %vm598_vm0, %v947_v48  ;;  %v938_v0 = vmax.f32 %v922_v52, 0.0 }
 0x128   : > { %v921_v63 = vadd.f32 %v1689_v15, %v877_v62  ;;  %v936_v2 = vmax.f32 %v920_v57, 0.0 }
 0x129   : > { %v939_v1 = vmax.f32 %v923_v61, 0.0 }
 0x12a   : > { %v937_v6 = vmax.f32 %v921_v63, 0.0 }
 0x12b   : > { %v949_v7 = vpack.c.bf16 %v939_v1, %v938_v0 }
 0x12c   : > { %v948_v10 = vpack.c.bf16 %v937_v6, %v936_v2  ;;  %v1878_v4 = vpop.f32.mrb[12].mxu0 }
 0x12d   : > { %v926_v11 = vadd.f32 %v1878_v4, %v1689_v15  ;;  %v890_v14 = vpop.f32.mrb[13].mxu0 }
 0x12e   : > { %v924_v18 = vadd.f32 %v1689_v15, %v890_v14  ;;  %v1879_v20 = vpop.f32.mrb[14].mxu0  ;;  %1896 = vmatprep.mubr.msk.bf16.mxu1 %vm598_vm0, %v948_v10 }
 0x12f   : > { %v927_v23 = vadd.f32 %v1879_v20, %v1689_v15  ;;  %v893_v24 = vpop.f32.mrb[15].mxu0  ;;  %1897 = vmatmul.mubr.msk.bf16.gmra.mrb[8].mxu1 %vm598_vm0, %v949_v7  ;;  %v942_v26 = vmax.f32 %v926_v11, 0.0 }
 0x130   : > { %v925_v25 = vadd.f32 %v1689_v15, %v893_v24  ;;  %v940_v28 = vmax.f32 %v924_v18, 0.0 }
 0x131   : > { %v943_v27 = vmax.f32 %v927_v23, 0.0 }
 0x132   : > { %v941_v29 = vmax.f32 %v925_v25, 0.0 }
 0x133   : > { %v951_v30 = vpack.c.bf16 %v943_v27, %v942_v26 }
 0x134   : > { %v950_v31 = vpack.c.bf16 %v941_v29, %v940_v28 }
 0x136   : > { %1900 = vmatprep.mubr.msk.bf16.mxu1 %vm598_vm0, %v950_v31 }
 0x137   : > { %1901 = vmatmul.mubr.msk.bf16.gmra.mrb[12].mxu1 %vm598_vm0, %v951_v30 }
 0x1f2   : > { %v1890_v33 = vpop.f32.mrb[0].mxu1 }
 0x1f3   : > { %v1058_v34 = vadd.f32 %v1890_v33, %v1690_v32  ;;  %v1049_v35 = vpop.f32.mrb[1].mxu1 }
 0x1f4   : > { %v1050_v36 = vadd.f32 %v1690_v32, %v1049_v35  ;;  %v1891_v37 = vpop.f32.mrb[2].mxu1 }
 0x1f5   : > { %v1061_v15 = vadd.f32 %v1891_v37, %v1690_v32  ;;  %v1052_v38 = vpop.f32.mrb[3].mxu1  ;;  %v1114_v40 = vmax.f32 %v1058_v34, 0.0 }
 0x1f6   : > { %v1053_v39 = vadd.f32 %v1690_v32, %v1052_v38  ;;  %v1112_v42 = vmax.f32 %v1050_v36, 0.0 }
 0x1f7   : > { %v1115_v41 = vmax.f32 %v1061_v15, 0.0 }
 0x1f8   : > { %v1113_v43 = vmax.f32 %v1053_v39, 0.0 }
 0x1f9   : > { %v1129_v44 = vpack.c.bf16 %v1115_v41, %v1114_v40 }
 0x1fa   : > { %v1128_v45 = vpack.c.bf16 %v1113_v43, %v1112_v42  ;;  %v1894_v46 = vpop.f32.mrb[4].mxu1  ;;  %v2232_v42 = vmov 0.0|0.0  }
 0x1fb   : > { %v1074_v47 = vadd.f32 %v1894_v46, %v1690_v32  ;;  %v1065_v48 = vpop.f32.mrb[5].mxu1  ;;  %1994 = vmatprep.subr.bf16.mxu0 %v2232_v42  ;;  %2026 = vmatprep.subr.bf16.mxu1 %v2232_v42 }
 0x1fc   : > { %v1066_v49 = vadd.f32 %v1690_v32, %v1065_v48  ;;  %v1895_v51 = vpop.f32.mrb[6].mxu1  ;;  %1908 = vmatprep.mubr.msk.bf16.mxu1 %vm1159_vm1, %v1128_v45 }
 0x1fd   : > { %v1077_v52 = vadd.f32 %v1895_v51, %v1690_v32  ;;  %v1068_v53 = vpop.f32.mrb[7].mxu1  ;;  %1909 = vmatmul.mubr.msk.bf16.vlgmr.msra.gmra.mrb[16].mxu1 %vm1159_vm1, %v1129_v44  ;;  %v1118_v58 = vmax.f32 %v1074_v47, 0.0  ;;  %v2035_v44 = vpack.c.bf16 %v2448_v54, %v2445_v50  ;;  %v2234_v50 = vmov 0.0   ;;  %v1297_v54 = vld [vmem:[%s2678_s9] sm:$0x1] }
 0x1fe   : > { %v1069_v57 = vadd.f32 %v1690_v32, %v1068_v53  ;;  %v1116_v62 = vmax.f32 %v1066_v49, 0.0  ;;  %2029 = vmatpush3.bf16.xpose.msk.msra.mxu1 %vm2538_vm2, %v2027_v21  ;;  %v2051_v21 = vpack.c.bf16 %v2470_v9, %v2468_v8  ;;  %1956 = vmatprep.mubr.msk.f32.mxu0 %vm2233_vm3, %v2234_v50 }
 0x1ff   : > { %v1119_v61 = vmax.f32 %v1077_v52, 0.0  ;;  %2030 = vmatprep.subr.bf16.mxu1 %v2232_v42 }
 0x200   : > { %v1117_v63 = vmax.f32 %v1069_v57, 0.0 }
 0x201   : > { %v1131_v0 = vpack.c.bf16 %v1119_v61, %v1118_v58 }
 0x202   : > { %v1130_v1 = vpack.c.bf16 %v1117_v63, %v1116_v62  ;;  %v1898_v2 = vpop.f32.mrb[8].mxu1 }
 0x203   : > { %v1090_v6 = vadd.f32 %v1898_v2, %v1690_v32  ;;  %v1081_v7 = vpop.f32.mrb[9].mxu1 }
 0x204   : > { %v1082_v10 = vadd.f32 %v1690_v32, %v1081_v7  ;;  %v1899_v4 = vpop.f32.mrb[10].mxu1  ;;  %1912 = vmatprep.mubr.msk.bf16.mxu1 %vm1159_vm1, %v1130_v1 }
 0x205   : > { %v1093_v11 = vadd.f32 %v1899_v4, %v1690_v32  ;;  %v1084_v14 = vpop.f32.mrb[11].mxu1  ;;  %1913 = vmatmul.mubr.msk.bf16.gmra.mrb[20].mxu1 %vm1159_vm1, %v1131_v0  ;;  %v1122_v20 = vmax.f32 %v1090_v6, 0.0 }
 0x206   : > { %v1085_v18 = vadd.f32 %v1690_v32, %v1084_v14  ;;  %v1120_v24 = vmax.f32 %v1082_v10, 0.0 }
 0x207   : > { %v1123_v23 = vmax.f32 %v1093_v11, 0.0 }
 0x208   : > { %v1121_v25 = vmax.f32 %v1085_v18, 0.0 }
 0x209   : > { %v1133_v26 = vpack.c.bf16 %v1123_v23, %v1122_v20 }
 0x20a   : > { %v1132_v27 = vpack.c.bf16 %v1121_v25, %v1120_v24  ;;  %v1902_v28 = vpop.f32.mrb[12].mxu1 }
 0x20b   : > { %v1106_v29 = vadd.f32 %v1902_v28, %v1690_v32  ;;  %v1097_v30 = vpop.f32.mrb[13].mxu1 }
 0x20c   : > { %v1098_v31 = vadd.f32 %v1690_v32, %v1097_v30  ;;  %v1903_v33 = vpop.f32.mrb[14].mxu1  ;;  %1916 = vmatprep.mubr.msk.bf16.mxu1 %vm1159_vm1, %v1132_v27 }
 0x20d   : > { %v1109_v34 = vadd.f32 %v1903_v33, %v1690_v32  ;;  %v1100_v35 = vpop.f32.mrb[15].mxu1  ;;  %1917 = vmatmul.mubr.msk.bf16.gmra.mrb[24].mxu1 %vm1159_vm1, %v1133_v26  ;;  %v1126_v37 = vmax.f32 %v1106_v29, 0.0 }
 0x20e   : > { %v1101_v36 = vadd.f32 %v1690_v32, %v1100_v35  ;;  %v1124_v38 = vmax.f32 %v1098_v31, 0.0  ;;  %v2031_v32 = vpack.c.bf16 %v2398_v22, %v2393_v19  ;;  %v2047_v19 = vpack.c.bf16 %v2466_v5, %v2464_v3 }
 0x20f   : > { %v1127_v15 = vmax.f32 %v1109_v34, 0.0  ;;  %v2055_v22 = vpack.c.bf16 %v2477_v13, %v2475_v12 }
 0x210   : > { %v1125_v39 = vmax.f32 %v1101_v36, 0.0  ;;  %2033 = vmatpush3.bf16.xpose.msk.msra.mxu1 %vm2538_vm2, %v2031_v32 }
 0x211   : > { %v1135_v40 = vpack.c.bf16 %v1127_v15, %v1126_v37  ;;  %2034 = vmatprep.subr.bf16.mxu1 %v2232_v42 }
 0x212   : > { %v1134_v41 = vpack.c.bf16 %v1125_v39, %v1124_v38 }
 0x214   : > { %1920 = vmatprep.mubr.msk.bf16.mxu1 %vm1159_vm1, %v1134_v41 }
 0x215   : > { %1921 = vmatmul.mubr.msk.bf16.gmra.mrb[28].mxu1 %vm1159_vm1, %v1135_v40 }
 0x216   : > { %1991 = vmatprep.mubr.msk.f32.mxu1 %vm2233_vm3, %v2234_v50 }
 0x218   : > { %2037 = vmatpush3.bf16.xpose.msk.msra.mxu1 %vm2538_vm2, %v2035_v44 }
 0x219   : > { %2038 = vmatprep.subr.bf16.mxu1 %v2232_v42 }
 0x220   : > { %2041 = vmatpush3.bf16.xpose.msk.msra.mxu1 %vm2538_vm2, %v2039_v16 }
 0x221   : > { %2042 = vmatprep.subr.bf16.mxu1 %v2232_v42 }
 0x228   : > { %2045 = vmatpush3.bf16.xpose.msk.msra.mxu1 %vm2538_vm2, %v2043_v17 }
 0x229   : > { %2046 = vmatprep.subr.bf16.mxu1 %v2232_v42 }
 0x230   : > { %2049 = vmatpush3.bf16.xpose.msk.msra.mxu1 %vm2538_vm2, %v2047_v19 }
 0x231   : > { %2050 = vmatprep.subr.bf16.mxu1 %v2232_v42 }
 0x238   : > { %2053 = vmatpush3.bf16.xpose.msk.msra.mxu1 %vm2538_vm2, %v2051_v21 }
 0x239   : > { %2054 = vmatprep.subr.bf16.mxu1 %v2232_v42 }
 0x240   : > { %2057 = vmatpush3.bf16.xpose.msk.msra.mxu1 %vm2538_vm2, %v2055_v22  ;;  %v1298_v22 = vld [vmem:[%s2679_s10] sm:$0x1] }
 0x247   : > { %1992 = vmatmul.mubr.msk.f32.vlgmr.msra.gmra.mrb[32].mxu1 %vm1159_vm1, %v1297_v54 }
 0x2d0   : > { %v1910_v60 = vpop.f32.mrb[16].mxu1 }
 0x2d1   : > { %v1227_v3 = vadd.f32 %v1910_v60, %v1703_v59  ;;  %v1218_v5 = vpop.f32.mrb[17].mxu1  ;;  %v1546_v60 = vpop.permute.xlu0 %1545 }
 0x2d2   : > { %v1219_v8 = vadd.f32 %v1703_v59, %v1218_v5  ;;  %v1911_v9 = vpop.f32.mrb[18].mxu1 }
 0x2d3   : > { %v1230_v12 = vadd.f32 %v1911_v9, %v1703_v59  ;;  %v1221_v13 = vpop.f32.mrb[19].mxu1  ;;  %v1283_v46 = vmax.f32 %v1227_v3, 0.0 }
 0x2d4   : > { %v1222_v45 = vadd.f32 %v1703_v59, %v1221_v13  ;;  %v1281_v48 = vmax.f32 %v1219_v8, 0.0 }
 0x2d5   : > { %v1284_v47 = vmax.f32 %v1230_v12, 0.0 }
 0x2d6   : > { %v1282_v49 = vmax.f32 %v1222_v45, 0.0 }
 0x2d7   : > { %v1999_v51 = vpack.c.bf16 %v1284_v47, %v1283_v46 }
 0x2d8   : > { %v1995_v53 = vpack.c.bf16 %v1282_v49, %v1281_v48  ;;  %v1914_v57 = vpop.f32.mrb[20].mxu1 }
 0x2d9   : > { %v1243_v58 = vadd.f32 %v1914_v57, %v1703_v59  ;;  %v1234_v61 = vpop.f32.mrb[21].mxu1 }
 0x2da   : > { %v1235_v62 = vadd.f32 %v1703_v59, %v1234_v61  ;;  %v1915_v63 = vpop.f32.mrb[22].mxu1  ;;  %1997 = vmatpush3.bf16.xpose.msk.msra.mxu0 %vm2591_vm5, %v1995_v53 }
 0x2db   : > { %v1246_v0 = vadd.f32 %v1915_v63, %v1703_v59  ;;  %v1237_v1 = vpop.f32.mrb[23].mxu1  ;;  %1998 = vmatprep.subr.bf16.mxu0 %v2232_v42  ;;  %v1287_v6 = vmax.f32 %v1243_v58, 0.0 }
 0x2dc   : > { %v1238_v2 = vadd.f32 %v1703_v59, %v1237_v1  ;;  %v1285_v10 = vmax.f32 %v1235_v62, 0.0 }
 0x2dd   : > { %v1288_v7 = vmax.f32 %v1246_v0, 0.0 }
 0x2de   : > { %v1286_v4 = vmax.f32 %v1238_v2, 0.0 }
 0x2df   : > { %v2007_v11 = vpack.c.bf16 %v1288_v7, %v1287_v6 }
 0x2e0   : > { %v2003_v14 = vpack.c.bf16 %v1286_v4, %v1285_v10  ;;  %v1918_v18 = vpop.f32.mrb[24].mxu1 }
 0x2e1   : > { %v1259_v20 = vadd.f32 %v1918_v18, %v1703_v59  ;;  %v1250_v23 = vpop.f32.mrb[25].mxu1 }
 0x2e2   : > { %v1251_v24 = vadd.f32 %v1703_v59, %v1250_v23  ;;  %v1919_v25 = vpop.f32.mrb[26].mxu1  ;;  %2001 = vmatpush3.bf16.xpose.msk.msra.mxu0 %vm2591_vm5, %v1999_v51 }
 0x2e3   : > { %v1262_v26 = vadd.f32 %v1919_v25, %v1703_v59  ;;  %v1253_v27 = vpop.f32.mrb[27].mxu1  ;;  %2002 = vmatprep.subr.bf16.mxu0 %v2232_v42  ;;  %v1291_v29 = vmax.f32 %v1259_v20, 0.0 }
 0x2e4   : > { %v1254_v28 = vadd.f32 %v1703_v59, %v1253_v27  ;;  %v1289_v31 = vmax.f32 %v1251_v24, 0.0 }
 0x2e5   : > { %v1292_v30 = vmax.f32 %v1262_v26, 0.0 }
 0x2e6   : > { %v1290_v33 = vmax.f32 %v1254_v28, 0.0 }
 0x2e7   : > { %v2015_v34 = vpack.c.bf16 %v1292_v30, %v1291_v29 }
 0x2e8   : > { %v2011_v35 = vpack.c.bf16 %v1290_v33, %v1289_v31  ;;  %v1922_v36 = vpop.f32.mrb[28].mxu1 }
 0x2e9   : > { %v1275_v37 = vadd.f32 %v1922_v36, %v1703_v59  ;;  %v1266_v15 = vpop.f32.mrb[29].mxu1 }
 0x2ea   : > { %v1267_v38 = vadd.f32 %v1703_v59, %v1266_v15  ;;  %v1923_v39 = vpop.f32.mrb[30].mxu1  ;;  %2005 = vmatpush3.bf16.xpose.msk.msra.mxu0 %vm2591_vm5, %v2003_v14 }
 0x2eb   : > { %v1278_v40 = vadd.f32 %v1923_v39, %v1703_v59  ;;  %v1269_v41 = vpop.f32.mrb[31].mxu1  ;;  %2006 = vmatprep.subr.bf16.mxu0 %v2232_v42  ;;  %v1295_v32 = vmax.f32 %v1275_v37, 0.0 }
 0x2ec   : > { %v1270_v43 = vadd.f32 %v1703_v59, %v1269_v41  ;;  %v1293_v16 = vmax.f32 %v1267_v38, 0.0  ;;  %v1550_v59 = vsub.s32 0, %v1549_v56 }
 0x2ed   : > { %v1296_v44 = vmax.f32 %v1278_v40, 0.0 }
 0x2ee   : > { %v1294_v17 = vmax.f32 %v1270_v43, 0.0  ;;  %v1551_v3 = vrot.slane %v1546_v60, %v1550_v59 }
 0x2ef   : > { %v2023_v19 = vpack.c.bf16 %v1296_v44, %v1295_v32 }
 0x2f0   : > { %v2019_v21 = vpack.c.bf16 %v1294_v17, %v1293_v16 }
 0x2f2   : > { %2009 = vmatpush3.bf16.xpose.msk.msra.mxu0 %vm2591_vm5, %v2007_v11 }
 0x2f3   : > { %2010 = vmatprep.subr.bf16.mxu0 %v2232_v42 }
 0x2fa   : > { %2013 = vmatpush3.bf16.xpose.msk.msra.mxu0 %vm2591_vm5, %v2011_v35 }
 0x2fb   : > { %2014 = vmatprep.subr.bf16.mxu0 %v2232_v42 }
 0x302   : > { %2017 = vmatpush3.bf16.xpose.msk.msra.mxu0 %vm2591_vm5, %v2015_v34 }
 0x303   : > { %2018 = vmatprep.subr.bf16.mxu0 %v2232_v42 }
 0x30a   : > { %2021 = vmatpush3.bf16.xpose.msk.msra.mxu0 %vm2591_vm5, %v2019_v21 }
 0x30b   : > { %2022 = vmatprep.subr.bf16.mxu0 %v2232_v42 }
 0x312   : > { %2025 = vmatpush3.bf16.xpose.msk.msra.mxu0 %vm2591_vm5, %v2023_v19 }
 0x319   : > { %1957 = vmatmul.mubr.msk.f32.vlgmr.msra.gmra.mrb[16].mxu0 %vm1299_vm4, %v1298_v22 }
 0x31a   : > { %v1538_v50 = vpop.f32.mrb[32].mxu1 }
 0x31b   : > { %v1993_v54 = vpop.f32.mrb[33].mxu1 }
 0x3ec   : > { %v1417_v5 = vpop.f32.mrb[16].mxu0 }
 0x3ed   : > { %v1539_v42 = vadd.f32 %v1538_v50, %v1417_v5  ;;  %v1958_v8 = vpop.f32.mrb[17].mxu0 }
 0x3ef   : > { %v1552_v9 = vadd.f32 %v1551_v3, %v1539_v42 }
 0x3f1   : > { %v1748_v12 = vclamps-f32 %v1552_v9, 30.0 }
 0x3f3   : > { %v1555_v13 = vsub.f32 0.0, %v1748_v12 }
 0x3f5   : > { %v1556_v45 = vmul.f32 1.442695, %v1555_v13 }
 0x3f7   : > { %2164 = vpow2.f32 %v1556_v45 }
 0x401   : > { %v2165_v46 = vpop.eup %2164 }
 0x402   : > { %v1558_v47 = vadd.f32 1.0, %v2165_v46 }
 0x404   : > { %2166 = vrcp.f32 %v1558_v47 }
 0x40e   : > { %v2167_v48 = vpop.eup %2166 }
 0x40f   : > { %1560 = vst [vmem:[%s424_s30] sm:$0x1] %v2167_v48 }
 0x410   : > { %2181 = shalt.err (!%p2178_p3)
}
 0x411   : > { %s2182_s18 = scalar_lea.hbm %s2627_s19, 16  ;;  %s2186_s16 = scalar_lea.hbm %s2681_s12, 32 }
 0x412   : > { %p2183_p4 = scmp.ne.s32.totalorder %s2627_s19, %s2182_s18  ;;  %p2187_p9 = scmp.lt.u32.totalorder %s2627_s19, %s2681_s12 }
 0x413   : > { %p2188_p10 = scmp.lt.u32.totalorder %s2186_s16, %s2182_s18  ;;  %p2190_p12 = scmp.lt.u32.totalorder %s2182_s18, %s2627_s19 }
 0x414   : > { %p2184_p7 = pnand %p2183_p4, %p2340_p5 }
 0x415   : > { %p2189_p11 = por %p2188_p10, %p2187_p9 }
 0x416   : > { %p2185_p8 = pneg %p2184_p7 }
 0x417   : > { %p2191_p13 = por %p2190_p12, %p2189_p11 }
 0x419   : > { %p2192_p0 = pnand %p2191_p13, %p2185_p8 }
 0x41b   : > { %2195 = shalt.err (!%p2192_p0)
}
 0x41c   : > { %2074 = dma.vmem_to_hbm [thread:$0]  (%p2340_p5), %s2629_s11, 16, %s2627_s19, %s1562_s21  }
 0x41d PF: > { %p2080_p1 = scmp.ge.s32.totalorder %s2230_s26, 2  ;;  %s1586_s0 = sand.u32 1, %s2218_s23  }
 0x41e   : > { %s1587_s22 = scalar_lea.sflag [#allocation4], %s1586_s0 }
 0x41f   : > { %p2077_p2 = pnand %p2080_p1, %p2344_p6 }
 0x421   : > { %2213 = dma.done.wait (!%p2077_p2), %s1587_s22, 16  }
 0x422   : > { %2215 = vsyncadd (!%p2077_p2), %s1587_s22, 4294967280  ;;  %p24_p3 = scmp.ge.s32.totalorder %s2328_s28, 4   ;;  %s2690_s23 = smov %s2222_s24 }
 0x423   : > { %s2691_s24 = smov %s2226_s25  ;;  %s2692_s25 = smov %s2338_s13 }
 0x424   : > { %s2693_s26 = smov %s2328_s28  ;;  %26 = sbr.rel (!%p24_p3) target bundleno = 6 (0x6), region = 106 }
 0x42b   :  { %1591 = vsyncpa [#allocation4], 1 }
 0x42c   :  { %1593 = vsyncpa [#allocation4 + $0x1], 1 }

</bundles_post_ra>
